<compile_context>
chip_gen: v5e
topology: v5e:2x2
jax: 0.10.0
libtpu: 0.0.40
codegen_flags: <defaults>
</compile_context>

<pallas_src>
import jax
import jax.numpy as jnp
from jax.experimental import pallas as pl
from jax.experimental.pallas import tpu as pltpu


def _channel_attention_kernel(x_ref, w1t_ref, w2t_ref, o_ref):
    # x_ref  : (Nb, C, H*W)  VMEM block (lane-dense last dim when HW % 128 == 0)
    # w1t_ref: (C, Cr)       VMEM, fc1 weight pre-transposed
    # w2t_ref: (Cr, C)       VMEM, fc2 weight pre-transposed
    # o_ref  : (Nb, C, H*W)  VMEM block
    inv_hw = jnp.float32(1.0 / x_ref.shape[-1])

    # --- Global pooling over the spatial axis.  f32 accumulation lives only
    # inside the reductions; the full-block f32 copy is never kept live across
    # the FC (avoids a block-sized VMEM spill/reload).
    avg = jnp.sum(x_ref[...].astype(jnp.float32), axis=-1) * inv_hw    # (Nb, C)
    mx = jnp.max(x_ref[...], axis=-1).astype(jnp.float32)              # (Nb, C)

    w1t = w1t_ref[...]                                                 # (C, Cr)
    w2t = w2t_ref[...]                                                 # (Cr, C)

    def _sigmoid(t):
        return 1.0 / (1.0 + jnp.exp(-t))

    def _mish(t):
        # mish(t) = t * tanh(softplus(t)); numerically stable softplus.
        sp = jnp.maximum(t, 0.0) + jnp.log(1.0 + jnp.exp(-jnp.abs(t)))
        return t * jnp.tanh(sp)

    def _fc(v):                                                        # (Nb, C)
        h = _mish(jnp.dot(v, w1t, preferred_element_type=jnp.float32))  # (Nb, Cr)
        y = jnp.dot(h, w2t, preferred_element_type=jnp.float32)         # (Nb, C)
        return _sigmoid(y)

    # Matches the PyTorch module: fc ends with Sigmoid, and the summed outputs
    # pass through Sigmoid again before gating.
    scale = _sigmoid(_fc(avg) + _fc(mx))                               # (Nb, C)

    # --- Gating: re-read x_ref (cheap vlds) and multiply in the input dtype;
    # only the tiny (Nb, C) scale is cast.  Single full-block store.
    o_ref[...] = x_ref[...] * scale.astype(o_ref.dtype)[:, :, None]


def channel_attention(x, fc1_weight, fc2_weight, *, batch_block=None):
    """ChannelAttention forward.

    x          : (N, C, H, W)
    fc1_weight : (C//r, C)   torch nn.Linear layout, bias=False
    fc2_weight : (C, C//r)   torch nn.Linear layout, bias=False
    """
    N, C, H, W = x.shape
    HW = H * W
    Cr = fc1_weight.shape[0]
    itemsize = x.dtype.itemsize

    # TODO(synk): if typical inputs have HW % 128 != 0 (e.g. 7x7 / 14x14 maps),
    # pad the spatial axis to a lane multiple once in the wrapper; the kernel
    # is still correct as-is but last-dim stores become masked (vst.msk).

    # Contiguous NCHW -> (N, C, H*W): metadata-only reshape, no HBM traffic.
    x2 = x.reshape(N, C, HW)
    w1t = jnp.asarray(fc1_weight, jnp.float32).T        # (C, Cr)
    w2t = jnp.asarray(fc2_weight, jnp.float32).T        # (Cr, C)

    if batch_block is None:
        # ~12 MiB of (input + output) per grid step: big enough to sit near the
        # HBM roofline and amortize the ~0.35us/step grid overhead, small
        # enough that double-buffering fits the explicitly raised scoped-VMEM
        # limit on every generation (incl. v7x's 64 MiB/TC).
        per_batch = 2 * C * HW * itemsize
        batch_block = max(1, min(N, (12 << 20) // max(per_batch, 1)))
        # Keep >= 2 grid steps so the "parallel" batch axis can feed both
        # TensorCores on v7x (no effect on single-TC v5e/v6e).
        if N >= 2:
            batch_block = min(batch_block, pl.cdiv(N, 2))
    batch_block = max(1, min(int(batch_block), N))

    # Ragged last block is safe: all per-row math is row-independent and the
    # pipeline masks writes for out-of-bounds rows.
    grid = (pl.cdiv(N, batch_block),)

    block_bytes = batch_block * C * HW * itemsize
    weight_bytes = 2 * (C * Cr) * 4
    # 2x double-buffered input block + 2x output block + weights + margin.
    vmem_limit = int(max(32 << 20, 4 * block_bytes + 4 * weight_bytes + (2 << 20)))

    cost = pl.CostEstimate(
        flops=3 * N * C * HW + 8 * N * C * Cr,
        transcendentals=6 * N * C,
        bytes_accessed=2 * N * C * HW * itemsize + 2 * weight_bytes,
    )

    out = pl.pallas_call(
        _channel_attention_kernel,
        out_shape=jax.ShapeDtypeStruct((N, C, HW), x.dtype),
        grid_spec=pltpu.PrefetchScalarGridSpec(
            num_scalar_prefetch=0,
            grid=grid,
            in_specs=[
                pl.BlockSpec((batch_block, C, HW), lambda b: (b, 0, 0)),
                pl.BlockSpec((C, Cr), lambda b: (0, 0)),
                pl.BlockSpec((Cr, C), lambda b: (0, 0)),
            ],
            out_specs=pl.BlockSpec((batch_block, C, HW), lambda b: (b, 0, 0)),
        ),
        compiler_params=pltpu.CompilerParams(
            dimension_semantics=("parallel",),
            vmem_limit_bytes=vmem_limit,
        ),
        cost_estimate=cost,
    )(x2, w1t, w2t)
    return out.reshape(N, C, H, W)


def _reference(x, fc1_weight, fc2_weight):
    avg = jnp.mean(x, axis=(2, 3))                      # (N, C)
    mx = jnp.max(x, axis=(2, 3))                        # (N, C)

    def mish(t):
        return t * jnp.tanh(jax.nn.softplus(t))

    def fc(v):
        h = mish(v @ fc1_weight.T)
        return jax.nn.sigmoid(h @ fc2_weight.T)

    scale = jax.nn.sigmoid(fc(avg) + fc(mx))            # (N, C)
    return x * scale[:, :, None, None]


if __name__ == "__main__":
    key = jax.random.PRNGKey(0)
    k1, k2, kx, kx2 = jax.random.split(key, 4)

    # Shapes consistent with ChannelAttention(num_channels=8, reduction_ratio=4).
    C, H, W = 8, 16, 16
    Cr = C // 4
    fc1_weight = jax.random.normal(k1, (Cr, C), dtype=jnp.float32) * 0.5  # Linear(C -> C/4, bias=False)
    fc2_weight = jax.random.normal(k2, (C, Cr), dtype=jnp.float32) * 0.5  # Linear(C/4 -> C, bias=False)

    # Case 1: default heuristic blocking.  N=2 -> batch_block=1, grid=(2,),
    # exercising the multi-step pipeline and weight residency.
    x = jax.random.normal(kx, (2, C, H, W), dtype=jnp.float32)
    out = jax.block_until_ready(channel_attention(x, fc1_weight, fc2_weight))
    ref = _reference(x, fc1_weight, fc2_weight)
    assert out.shape == x.shape
    assert jnp.allclose(out, ref, atol=1e-5, rtol=1e-5), "case1 mismatch vs reference"

    # Case 2: ragged grid.  N=5 with batch_block=2 -> grid=(3,), last block
    # partial, exercising the cdiv / masked-store path.
    x5 = jax.random.normal(kx2, (5, C, H, W), dtype=jnp.float32)
    out5 = jax.block_until_ready(
        channel_attention(x5, fc1_weight, fc2_weight, batch_block=2))
    ref5 = _reference(x5, fc1_weight, fc2_weight)
    assert jnp.allclose(out5, ref5, atol=1e-5, rtol=1e-5), "case2 mismatch vs reference"

    print("KERNEL_OK")
</pallas_src>

<mosaic_0001>
module attributes {stable_mosaic.version = 11 : i64} {
  func.func @_channel_attention_kernel(%arg0: i32, %arg1: memref<1x8x256xf32, #tpu.memory_space<vmem>>, %arg2: memref<8x2xf32, #tpu.memory_space<vmem>>, %arg3: memref<2x8xf32, #tpu.memory_space<vmem>>, %arg4: memref<1x8x256xf32, #tpu.memory_space<vmem>>) attributes {dimension_semantics = [#tpu.dimension_semantics<parallel>], iteration_bounds = array<i64: 2>, scalar_prefetch = 0 : i64, scratch_operands = 0 : i64, tpu.core_type = #tpu.core_type<tc>, window_params = [{transform_indices = @transform_0, window_bounds = array<i64: 1, 8, 256>}, {pipeline_mode = #tpu.pipeline_mode<synchronous>, transform_indices = @transform_1, window_bounds = array<i64: 8, 2>}, {pipeline_mode = #tpu.pipeline_mode<synchronous>, transform_indices = @transform_2, window_bounds = array<i64: 2, 8>}, {transform_indices = @transform_3, window_bounds = array<i64: 1, 8, 256>}]} {
    %c0 = arith.constant 0 : index
    %c0_0 = arith.constant 0 : index
    %c0_1 = arith.constant 0 : index
    %0 = vector.load %arg1[%c0, %c0_0, %c0_1] : memref<1x8x256xf32, #tpu.memory_space<vmem>>, vector<1x8x256xf32>
    %cst = arith.constant dense<0.000000e+00> : vector<1x8xf32>
    %1 = vector.multi_reduction <add>, %0, %cst [2] : vector<1x8x256xf32> to vector<1x8xf32>
    %cst_2 = arith.constant 3.906250e-03 : f32
    %2 = vector.broadcast %cst_2 : f32 to vector<1x8xf32>
    %3 = arith.mulf %1, %2 : vector<1x8xf32>
    %c0_3 = arith.constant 0 : index
    %c0_4 = arith.constant 0 : index
    %c0_5 = arith.constant 0 : index
    %4 = vector.load %arg1[%c0_3, %c0_4, %c0_5] : memref<1x8x256xf32, #tpu.memory_space<vmem>>, vector<1x8x256xf32>
    %cst_6 = arith.constant dense<0xFF800000> : vector<1x8xf32>
    %5 = vector.multi_reduction <maximumf>, %4, %cst_6 [2] : vector<1x8x256xf32> to vector<1x8xf32>
    %c0_7 = arith.constant 0 : index
    %c0_8 = arith.constant 0 : index
    %6 = vector.load %arg2[%c0_7, %c0_8] : memref<8x2xf32, #tpu.memory_space<vmem>>, vector<8x2xf32>
    %c0_9 = arith.constant 0 : index
    %c0_10 = arith.constant 0 : index
    %7 = vector.load %arg3[%c0_9, %c0_10] : memref<2x8xf32, #tpu.memory_space<vmem>>, vector<2x8xf32>
    %cst_11 = arith.constant dense<0.000000e+00> : vector<1x2xf32>
    %8 = tpu.matmul %3, %6, %cst_11 {dimension_numbers = #tpu.dot_dimension_numbers<[1], [0], [0], [1], [0, 0, 1, 1], [], []>} : vector<1x8xf32>, vector<8x2xf32>, vector<1x2xf32> -> vector<1x2xf32>
    %cst_12 = arith.constant 0.000000e+00 : f32
    %9 = vector.broadcast %cst_12 : f32 to vector<1x2xf32>
    %10 = arith.maximumf %8, %9 : vector<1x2xf32>
    %11 = math.absf %8 : vector<1x2xf32>
    %cst_13 = arith.constant 0.000000e+00 : f32
    %12 = vector.broadcast %cst_13 : f32 to vector<1x2xf32>
    %13 = arith.subf %12, %11 : vector<1x2xf32>
    %14 = math.exp %13 : vector<1x2xf32>
    %cst_14 = arith.constant 1.000000e+00 : f32
    %15 = vector.broadcast %cst_14 : f32 to vector<1x2xf32>
    %16 = arith.addf %15, %14 : vector<1x2xf32>
    %17 = math.log %16 : vector<1x2xf32>
    %18 = arith.addf %10, %17 : vector<1x2xf32>
    %19 = math.tanh %18 : vector<1x2xf32>
    %20 = arith.mulf %8, %19 : vector<1x2xf32>
    %cst_15 = arith.constant dense<0.000000e+00> : vector<1x8xf32>
    %21 = tpu.matmul %20, %7, %cst_15 {dimension_numbers = #tpu.dot_dimension_numbers<[1], [0], [0], [1], [0, 0, 1, 1], [], []>} : vector<1x2xf32>, vector<2x8xf32>, vector<1x8xf32> -> vector<1x8xf32>
    %cst_16 = arith.constant 0.000000e+00 : f32
    %22 = vector.broadcast %cst_16 : f32 to vector<1x8xf32>
    %23 = arith.subf %22, %21 : vector<1x8xf32>
    %24 = math.exp %23 : vector<1x8xf32>
    %cst_17 = arith.constant 1.000000e+00 : f32
    %25 = vector.broadcast %cst_17 : f32 to vector<1x8xf32>
    %26 = arith.addf %25, %24 : vector<1x8xf32>
    %cst_18 = arith.constant 1.000000e+00 : f32
    %27 = vector.broadcast %cst_18 : f32 to vector<1x8xf32>
    %28 = arith.divf %27, %26 : vector<1x8xf32>
    %cst_19 = arith.constant dense<0.000000e+00> : vector<1x2xf32>
    %29 = tpu.matmul %5, %6, %cst_19 {dimension_numbers = #tpu.dot_dimension_numbers<[1], [0], [0], [1], [0, 0, 1, 1], [], []>} : vector<1x8xf32>, vector<8x2xf32>, vector<1x2xf32> -> vector<1x2xf32>
    %cst_20 = arith.constant 0.000000e+00 : f32
    %30 = vector.broadcast %cst_20 : f32 to vector<1x2xf32>
    %31 = arith.maximumf %29, %30 : vector<1x2xf32>
    %32 = math.absf %29 : vector<1x2xf32>
    %cst_21 = arith.constant 0.000000e+00 : f32
    %33 = vector.broadcast %cst_21 : f32 to vector<1x2xf32>
    %34 = arith.subf %33, %32 : vector<1x2xf32>
    %35 = math.exp %34 : vector<1x2xf32>
    %cst_22 = arith.constant 1.000000e+00 : f32
    %36 = vector.broadcast %cst_22 : f32 to vector<1x2xf32>
    %37 = arith.addf %36, %35 : vector<1x2xf32>
    %38 = math.log %37 : vector<1x2xf32>
    %39 = arith.addf %31, %38 : vector<1x2xf32>
    %40 = math.tanh %39 : vector<1x2xf32>
    %41 = arith.mulf %29, %40 : vector<1x2xf32>
    %cst_23 = arith.constant dense<0.000000e+00> : vector<1x8xf32>
    %42 = tpu.matmul %41, %7, %cst_23 {dimension_numbers = #tpu.dot_dimension_numbers<[1], [0], [0], [1], [0, 0, 1, 1], [], []>} : vector<1x2xf32>, vector<2x8xf32>, vector<1x8xf32> -> vector<1x8xf32>
    %cst_24 = arith.constant 0.000000e+00 : f32
    %43 = vector.broadcast %cst_24 : f32 to vector<1x8xf32>
    %44 = arith.subf %43, %42 : vector<1x8xf32>
    %45 = math.exp %44 : vector<1x8xf32>
    %cst_25 = arith.constant 1.000000e+00 : f32
    %46 = vector.broadcast %cst_25 : f32 to vector<1x8xf32>
    %47 = arith.addf %46, %45 : vector<1x8xf32>
    %cst_26 = arith.constant 1.000000e+00 : f32
    %48 = vector.broadcast %cst_26 : f32 to vector<1x8xf32>
    %49 = arith.divf %48, %47 : vector<1x8xf32>
    %50 = arith.addf %28, %49 : vector<1x8xf32>
    %cst_27 = arith.constant 0.000000e+00 : f32
    %51 = vector.broadcast %cst_27 : f32 to vector<1x8xf32>
    %52 = arith.subf %51, %50 : vector<1x8xf32>
    %53 = math.exp %52 : vector<1x8xf32>
    %cst_28 = arith.constant 1.000000e+00 : f32
    %54 = vector.broadcast %cst_28 : f32 to vector<1x8xf32>
    %55 = arith.addf %54, %53 : vector<1x8xf32>
    %cst_29 = arith.constant 1.000000e+00 : f32
    %56 = vector.broadcast %cst_29 : f32 to vector<1x8xf32>
    %57 = arith.divf %56, %55 : vector<1x8xf32>
    %c0_30 = arith.constant 0 : index
    %c0_31 = arith.constant 0 : index
    %c0_32 = arith.constant 0 : index
    %58 = vector.load %arg1[%c0_30, %c0_31, %c0_32] : memref<1x8x256xf32, #tpu.memory_space<vmem>>, vector<1x8x256xf32>
    %59 = vector.shape_cast %57 : vector<1x8xf32> to vector<1x8x1xf32>
    %60 = vector.broadcast %59 : vector<1x8x1xf32> to vector<1x8x256xf32>
    %61 = arith.mulf %58, %60 : vector<1x8x256xf32>
    %c0_33 = arith.constant 0 : index
    %c0_34 = arith.constant 0 : index
    %c0_35 = arith.constant 0 : index
    %62 = vector.load %arg4[%c0_33, %c0_34, %c0_35] : memref<1x8x256xf32, #tpu.memory_space<vmem>>, vector<1x8x256xf32>
    tpu.vector_store %arg4[%c0_33, %c0_34, %c0_35], %61 {strides = array<i32>} : memref<1x8x256xf32, #tpu.memory_space<vmem>>, vector<1x8x256xf32>,
    return
  }
  func.func @transform_0(%arg0: i32) -> (i32, i32, i32) {
    %c0_i32 = arith.constant 0 : i32
    %c0_i32_0 = arith.constant 0 : i32
    %c0_i32_1 = arith.constant 0 : i32
    return %arg0, %c0_i32, %c0_i32_0 : i32, i32, i32
  }
  func.func @transform_1(%arg0: i32) -> (i32, i32) {
    %c0_i32 = arith.constant 0 : i32
    %c0_i32_0 = arith.constant 0 : i32
    %c0_i32_1 = arith.constant 0 : i32
    return %c0_i32, %c0_i32_0 : i32, i32
  }
  func.func @transform_2(%arg0: i32) -> (i32, i32) {
    %c0_i32 = arith.constant 0 : i32
    %c0_i32_0 = arith.constant 0 : i32
    %c0_i32_1 = arith.constant 0 : i32
    return %c0_i32, %c0_i32_0 : i32, i32
  }
  func.func @transform_3(%arg0: i32) -> (i32, i32, i32) {
    %c0_i32 = arith.constant 0 : i32
    %c0_i32_0 = arith.constant 0 : i32
    %c0_i32_1 = arith.constant 0 : i32
    return %arg0, %c0_i32, %c0_i32_0 : i32, i32, i32
  }
}

</mosaic_0001>

<bundles_post_ra>
// kernel: tpu_custom_call.1
= control target key start
LH: loop header
LB: loop body
LE: loop exit
PB: predicated region body
PF: predicated region fallthrough
CT: control target
= control target key end

     0   :  { %8 = vsyncpa [#allocation3], 0  ;;  %s839_s0 = inlined_call_operand.hbm [shape: f32[2,8,256], index: 0, kind: input, shape index: {}]   ;;  %s840_s1 = inlined_call_operand.vmem [shape: f32[8,2], index: 1, kind: input, shape index: {}]   ;;  %s841_s2 = inlined_call_operand.vmem [shape: f32[2,8], index: 2, kind: input, shape index: {}]   ;;  %s842_s3 = inlined_call_operand.hbm [shape: f32[2,8,256], index: 3, kind: output, shape index: {}]  }
   0x1   :  { %10 = vsyncpa [#allocation3 + $0x1], 0 }
   0x2   :  { %11 = vsyncpa [#allocation4], 0 }
   0x3   :  { %13 = vsyncpa [#allocation4 + $0x1], 0  ;;  %s692_s12 = smov 0   ;;  %s694_s13 = smov 0  }
   0x4   :  { %s696_s14 = smov 0   ;;  %s698_s15 = smov 0  }
   0x5 LB: > { %s713_s16 = sadd.s32 4294967295, %s670_s15   ;;  %s480_s17 = sadd.s32 4294967294, %s670_s15   ;;  %s670_s15 = sphi %s698_s15, %s852_s15   ;;  %s666_s14 = sphi %s696_s14, %s851_s14   ;;  %s662_s13 = sphi %s694_s13, %s850_s13   ;;  %s658_s12 = sphi %s692_s12, %s849_s12  }
   0x6   : > { %s717_s18 = sadd.s32 1, %s670_s15   ;;  %s26_s19 = sadd.s32 1, %s666_s14 }
   0x7   : > { %s23_s20 = ssub.s32 %s670_s15, %s717_s18  ;;  %p33_p0 = scmp.ne.s32.totalorder %s666_s14, %s662_s13 }
   0x8   : > { %p24_p1 = scmp.eq.s32.totalorder %s23_s20, 0  ;;  %p34_p2 = scmp.eq.s32.totalorder %s670_s15, 0 }
   0x9   : > { %p39_p3 = scmp.ne.s32.totalorder %s662_s13, %s658_s12  ;;  %p40_p4 = scmp.eq.s32.totalorder %s713_s16, 0 }
   0xa   : > { %s729_s21 = scalar_select %p24_p1, %s666_s14, %s26_s19  }
   0xb   : > { %p731_p5 = por %p34_p2, %p33_p0  ;;  %p735_p6 = por %p40_p4, %p39_p3 }
   0xc   : > { %p105_p7 = scmp.eq.s32.totalorder %s713_s16, 1  ;;  %p111_p8 = scmp.eq.s32.totalorder %s480_s17, 1 }
   0xd   : > { %p514_p10 = scmp.lt.s32.totalorder %s670_s15, 2  ;;  %s137_s26 = sand.u32 1, %s666_s14  }
   0xe   : > { %p742_p11 = por %p105_p7, %p33_p0  ;;  %p746_p12 = por %p111_p8, %p39_p3 }
   0xf   : > { %s500_s27 = sshll.u32 %s670_s15, 4  ;;  %s483_s28 = sshll.u32 %s137_s26, 4 }
  0x10   : > { %s146_s4 = scalar_lea.hbm %s839_s0, %s500_s27  ;;  %s141_s6 = scalar_lea.vmem [#allocation2], %s483_s28 }
  0x11   : > { %s148_s5 = sshll.u32 %s146_s4, 4  ;;  %s150_s7 = sshll.u32 %s141_s6, 4  ;;  %s149_s5 = int_to_ptr.hbm [resolvable:$true] %s148_s5  ;;  %s151_s7 = int_to_ptr.vmem [resolvable:$true] %s150_s7 }
  0x12   : > { %p757_p13 = pnand %p514_p10, %p731_p5  ;;  %p486_p0 = scmp.ge.s32.totalorder %s670_s15, 1 }
  0x13   : > { %p155_p1 = scmp.lt.s32.totalorder %s670_s15, 3  ;;  %s138_s9 = scalar_lea.sflag [#allocation3], %s137_s26 }
  0x14   : > { %s574_s10 = sshra.s32 %s149_s5, 4  ;;  %p578_p3 = pneg %p757_p13  ;;  %s575_s10 = int_to_ptr.hbm [resolvable:$true] %s574_s10 }
  0x15   : > { %s576_s11 = scalar_lea.hbm %s575_s10, 16  ;;  %s581_s20 = scalar_lea.hbm %s839_s0, 32 }
  0x16   : > { %p577_p2 = scmp.ne.s32.totalorder %s575_s10, %s576_s11  ;;  %p582_p5 = scmp.lt.s32.totalorder %s575_s10, %s839_s0 }
  0x17   : > { %p583_p8 = scmp.lt.s32.totalorder %s581_s20, %s576_s11 }
  0x18   : > { %p579_p4 = pnand %p578_p3, %p577_p2 }
  0x19   : > { %p584_p10 = por %p583_p8, %p582_p5 }
  0x1a   : > { %p580_p7 = pneg %p579_p4 }
  0x1c   : > { %p585_p9 = pnand %p584_p10, %p580_p7 }
  0x1e   : > { %588 = shalt.err (!%p585_p9)
}
  0x1f   : > { %509 = dma.hbm_to_vmem [thread:$0]  (!%p757_p13), %s149_s5, 256, %s151_s7, %s138_s9  }
  0x20   : > { %p156_p2 = pnand %p486_p0, %p155_p1 }
  0x21   : > { %s778_s26 = sand.u32 (!%p156_p2), 1, %s662_s13  }
  0x22   : > { %159 = sbr.rel (%p156_p2) target bundleno = 645 (0x285), region = 32  ;;  %s487_s28 = sshll.u32 (!%p156_p2), %s778_s26, 4 }
  0x23   : > { %s162_s29 = scalar_lea.sflag (!%p156_p2), [#allocation3], %s778_s26  ;;  %s165_s30 = scalar_lea.vmem (!%p156_p2), [#allocation2], %s487_s28 }
  0x27   : > { %649 = dma.done.wait (%p735_p6), %s162_s29, 256  }
  0x28   : > { %651 = vsyncadd (%p735_p6), %s162_s29, 4294967040  ;;  %v788_v0 = vld [vmem:[%s165_s30] sm:$0xff]  ;;  %v790_v1 = vld [vmem:[%s165_s30 + $0x8] sm:$0xff]  ;;  %v201_v5 = vlaneseq  ;;  %vm204_vm0 = vcmask 64512   ;;  %vm242_vm1 = vcmask 1041408   ;;  %vm238_vm2 = vcmask 15360  }
  0x29   : > { %v195_v2 = vmax.f32 %v788_v0, %v790_v1  ;;  %v191_v3 = vadd.f32 %v790_v1, %v788_v0  ;;  %v198_v4 = vld [vmem:[%s840_s1] sm:$0xff]  ;;  %s501_s7 = sshll.u32 %s713_s16, 4  ;;  %s188_s11 = scalar_lea.vmem [#allocation5], %s487_s28 }
  0x2a   : > { %304 = vmatpush.msra.mxu2 %v198_v4  ;;  %222 = vmatpush.msra.mxu0 %v198_v4  ;;  %v202_v6 = vand.u32 127, %v201_v5  ;;  %v199_v14 = vld [vmem:[%s841_s2] sm:$0x3]  ;;  %v384_v42 = vshrl.u32 %v201_v5, 7  ;;  %s405_s10 = scalar_lea.hbm %s842_s3, %s501_s7  ;;  %s407_s17 = sshll.u32 %s188_s11, 4  ;;  %s408_s17 = int_to_ptr.vmem [resolvable:$true] %s407_s17 }
  0x2b   : > { %196 = vmax.xlane.f32.xlu0 %v195_v2  ;;  %493 = vmatpush.msk.msra.mxu3 %vm242_vm1, %v199_v14  ;;  %s409_s19 = sshll.u32 %s405_s10, 4  ;;  %s394_s20 = scalar_lea.sflag [#allocation4], %s778_s26  ;;  %s410_s19 = int_to_ptr.hbm [resolvable:$true] %s409_s19 }
  0x2c   : > { %490 = vmatpush.msk.msra.mxu1 %vm242_vm1, %v199_v14  ;;  %548 = vset.pattern.permute.xlu1 %v384_v42  ;;  %s618_s16 = sshra.s32 %s410_s19, 4  ;;  %s624_s29 = scalar_lea.hbm %s842_s3, 32  ;;  %s619_s16 = int_to_ptr.hbm [resolvable:$true] %s618_s16 }
  0x2d   : > { %549 = vset.pattern.permute.xlu0 %v384_v42  ;;  %s620_s22 = scalar_lea.hbm %s619_s16, 16  ;;  %p625_p0 = scmp.lt.s32.totalorder %s619_s16, %s842_s3 }
  0x2e   : > { %p621_p6 = scmp.ne.s32.totalorder %s619_s16, %s620_s22  ;;  %p626_p1 = scmp.lt.s32.totalorder %s624_s29, %s620_s22 }
  0x30   : > { %p622_p9 = pnand %p621_p6, %p742_p11  ;;  %p627_p3 = por %p626_p1, %p625_p0 }
  0x32   : > { %p623_p13 = pneg %p622_p9 }
  0x33   : > { %192 = vadd.xlane.f32.xlu0 %v191_v3 }
  0x34   : > { %p628_p4 = pnand %p627_p3, %p623_p13 }
  0x9e   : > { %v197_v7 = vpop.xlane.xlu0 %196 }
  0x9f   : > { %v286_v8 = vperm.slane %v197_v7, %v202_v6 }
  0xa1   : > { %492 = vmatmul.msk.f32.vlgmr.msra.gmra.mxu2 %vm204_vm0, %v286_v8 }
  0xa6   : > { %v193_v9 = vpop.xlane.xlu0 %192 }
  0xa7   : > { %v194_v10 = vmul.f32 0.00390625, %v193_v9 }
  0xa9   : > { %v203_v11 = vperm.slane %v194_v10, %v202_v6 }
  0xab   : > { %489 = vmatmul.msk.f32.vlgmr.msra.gmra.mxu0 %vm204_vm0, %v203_v11 }
 0x124   : > { %v306_v12 = vpop.f32.mrf.mxu2 }
 0x125   : > { %v310_v13 = vand.u32 2147483647, %v306_v12  ;;  %v309_v26 = vmax.f32 %v306_v12, 0.0 }
 0x127   : > { %v311_v15 = vsub.f32 0.0, %v310_v13 }
 0x128   : > { %v224_v16 = vpop.f32.mrf.mxu0 }
 0x129   : > { %v312_v17 = vmul.f32 1.442695, %v311_v15  ;;  %v228_v18 = vand.u32 2147483647, %v224_v16  ;;  %v227_v30 = vmax.f32 %v224_v16, 0.0 }
 0x12b   : > { %550 = vpow2.f32 %v312_v17  ;;  %v229_v19 = vsub.f32 0.0, %v228_v18 }
 0x12d   : > { %v230_v20 = vmul.f32 1.442695, %v229_v19 }
 0x12f   : > { %552 = vpow2.f32 %v230_v20 }
 0x131   : > { %v551_v21 = vpop.eup %550 }
 0x132   : > { %v314_v22 = vadd.f32 1.0, %v551_v21 }
 0x134   : > { %554 = vlog2.f32 %v314_v22 }
 0x135   : > { %v553_v23 = vpop.eup %552 }
 0x136   : > { %v232_v24 = vadd.f32 1.0, %v553_v23 }
 0x138   : > { %556 = vlog2.f32 %v232_v24 }
 0x13a   : > { %v555_v25 = vpop.eup %554 }
 0x13b   : > { %v316_v27 = vmul.f32 0.6931472, %v555_v25 }
 0x13d   : > { %v317_v28 = vadd.f32 %v316_v27, %v309_v26 }
 0x13e   : > { %v557_v29 = vpop.eup %556 }
 0x13f   : > { %558 = vtanh.f32 %v317_v28  ;;  %v234_v31 = vmul.f32 0.6931472, %v557_v29 }
 0x141   : > { %v235_v32 = vadd.f32 %v234_v31, %v227_v30 }
 0x143   : > { %560 = vtanh.f32 %v235_v32 }
 0x145   : > { %v559_v33 = vpop.eup %558 }
 0x146   : > { %v319_v34 = vmul.f32 %v559_v33, %v306_v12 }
 0x148   : > { %494 = vmatmul.msk.f32.vlgmr.msra.gmra.mxu3 %vm238_vm2, %v319_v34 }
 0x149   : > { %v561_v35 = vpop.eup %560 }
 0x14a   : > { %v237_v36 = vmul.f32 %v561_v35, %v224_v16 }
 0x14c   : > { %491 = vmatmul.msk.f32.vlgmr.msra.gmra.mxu1 %vm238_vm2, %v237_v36 }
 0x1c9   : > { %v263_v37 = vpop.f32.mrf.mxu1 }
 0x1ca   : > { %v266_v38 = vsub.f32 0.0, %v263_v37 }
 0x1cb   : > { %v340_v39 = vpop.f32.mrf.mxu3 }
 0x1cc   : > { %v267_v40 = vmul.f32 1.442695, %v266_v38  ;;  %v343_v41 = vsub.f32 0.0, %v340_v39 }
 0x1ce   : > { %562 = vpow2.f32 %v267_v40  ;;  %v344_v43 = vmul.f32 1.442695, %v343_v41 }
 0x1d0   : > { %564 = vpow2.f32 %v344_v43 }
 0x1d4   : > { %v563_v44 = vpop.eup %562 }
 0x1d5   : > { %v269_v45 = vadd.f32 1.0, %v563_v44 }
 0x1d6   : > { %v565_v46 = vpop.eup %564 }
 0x1d7   : > { %566 = vrcp.f32 %v269_v45  ;;  %v346_v47 = vadd.f32 1.0, %v565_v46  ;;  %vm275_vm4 = vweird.f32 %v269_v45  ;;  %v281_v56 = vand.u32 2147483648, %v269_v45 }
 0x1d8   : > { %v279_v58 = vand.u32 2147483647, %v269_v45 }
 0x1d9   : > { %568 = vrcp.f32 %v346_v47  ;;  %v358_v57 = vand.u32 2147483648, %v346_v47  ;;  %v356_v60 = vand.u32 2147483647, %v346_v47  ;;  %vm352_vm7 = vweird.f32 %v346_v47 }
 0x1da   : > { %v282_v63 = vor.u32 1.1754944e-38, %v281_v56  ;;  %vm280_vm9 = vcmp.eq.f32.partialorder %v279_v58, 8.507059e+37 }
 0x1db   : > { %v359_v2 = vor.u32 1.1754944e-38, %v358_v57  ;;  %vm357_vm10 = vcmp.eq.f32.partialorder %v356_v60, 8.507059e+37 }
 0x1dd   : > { %v567_v48 = vpop.eup %566 }
 0x1de   : > { %v271_v49 = vmul.f32 %v567_v48, %v269_v45  ;;  %vm276_vm3 = vweird.f32 %v567_v48 }
 0x1df   : > { %v569_v50 = vpop.eup %568  ;;  %vm277_vm6 = vmor %vm275_vm4, %vm276_vm3 }
 0x1e0   : > { %v272_v51 = vsub.f32 1.0, %v271_v49  ;;  %v348_v52 = vmul.f32 %v569_v50, %v346_v47  ;;  %vm353_vm5 = vweird.f32 %v569_v50 }
 0x1e1   : > { %vm354_vm8 = vmor %vm352_vm7, %vm353_vm5 }
 0x1e2   : > { %v273_v53 = vmul.f32 %v567_v48, %v272_v51  ;;  %v349_v54 = vsub.f32 1.0, %v348_v52 }
 0x1e4   : > { %v274_v55 = vadd.f32 %v567_v48, %v273_v53  ;;  %v350_v59 = vmul.f32 %v569_v50, %v349_v54 }
 0x1e6   : > { %v278_v61 = vsel %vm277_vm6, %v567_v48, %v274_v55  ;;  %v351_v62 = vadd.f32 %v569_v50, %v350_v59 }
 0x1e7   : > { %v283_v4 = vsel %vm280_vm9, %v282_v63, %v278_v61 }
 0x1e8   : > { %v355_v3 = vsel %vm354_vm8, %v569_v50, %v351_v62 }
 0x1e9   : > { %v360_v5 = vsel %vm357_vm10, %v359_v2, %v355_v3 }
 0x1ea   : > { %v362_v6 = vadd.f32 %v360_v5, %v283_v4 }
 0x1ec   : > { %v363_v7 = vsub.f32 0.0, %v362_v6 }
 0x1ee   : > { %v364_v8 = vmul.f32 1.442695, %v363_v7 }
 0x1f0   : > { %570 = vpow2.f32 %v364_v8 }
 0x1f6   : > { %v571_v9 = vpop.eup %570 }
 0x1f7   : > { %v366_v10 = vadd.f32 1.0, %v571_v9 }
 0x1f9   : > { %572 = vrcp.f32 %v366_v10  ;;  %v378_v14 = vand.u32 2147483648, %v366_v10  ;;  %v376_v16 = vand.u32 2147483647, %v366_v10  ;;  %vm372_vm12 = vweird.f32 %v366_v10 }
 0x1fb   : > { %v379_v18 = vor.u32 1.1754944e-38, %v378_v14  ;;  %vm377_vm14 = vcmp.eq.f32.partialorder %v376_v16, 8.507059e+37 }
 0x1ff   : > { %v573_v11 = vpop.eup %572 }
 0x200   : > { %v368_v12 = vmul.f32 %v573_v11, %v366_v10  ;;  %vm373_vm11 = vweird.f32 %v573_v11 }
 0x201   : > { %vm374_vm13 = vmor %vm372_vm12, %vm373_vm11 }
 0x202   : > { %v369_v13 = vsub.f32 1.0, %v368_v12 }
 0x204   : > { %v370_v15 = vmul.f32 %v573_v11, %v369_v13 }
 0x206   : > { %v371_v17 = vadd.f32 %v573_v11, %v370_v15 }
 0x208   : > { %v375_v19 = vsel %vm374_vm13, %v573_v11, %v371_v17 }
 0x209   : > { %v380_v20 = vsel %vm377_vm14, %v379_v18, %v375_v19 }
 0x20a   : > { %v382_v21 = vperm.slane %v380_v20, 0 }
 0x20c   : > { %387 = vperm.xlu1 %548, %v382_v21  }
 0x27e   : > { %v388_v22 = vpop.permute.xlu1 %387 }
 0x27f   : > { %v389_v23 = vmul.f32 %v388_v22, %v788_v0  ;;  %v390_v24 = vmul.f32 %v388_v22, %v790_v1 }
 0x281   : > { %391 = vst [vmem:[%s188_s11] sm:$0xff] %v389_v23 }
 0x282   : > { %392 = vst [vmem:[%s188_s11 + $0x8] sm:$0xff] %v390_v24 }
 0x283   : > { %631 = shalt.err (!%p628_p4)
}
 0x284   : > { %504 = dma.vmem_to_hbm [thread:$0]  (%p742_p11), %s408_s17, 256, %s410_s19, %s394_s20  }
 0x285 PF: > { %s421_s26 = sand.u32 1, %s658_s12   ;;  %p848_p7 = scmp.ge.s32.totalorder %s670_s15, 2 }
 0x286   : > { %s422_s5 = scalar_lea.sflag [#allocation4], %s421_s26 }
 0x287   : > { %p511_p5 = pnand %p848_p7, %p746_p12 }
 0x289   : > { %p512_p8 = pneg %p511_p5 }
 0x28b   : > { %653 = dma.done.wait (%p512_p8), %s422_s5, 256  }
 0x28c   : > { %655 = vsyncadd (%p512_p8), %s422_s5, 4294967040  ;;  %p16_p10 = scmp.ge.s32.totalorder %s717_s18, 4   ;;  %s849_s12 = smov %s662_s13 }
 0x28d   : > { %s850_s13 = smov %s666_s14  ;;  %s851_s14 = smov %s729_s21 }
 0x28e   : > { %s852_s15 = smov %s717_s18  ;;  %18 = sbr.rel (!%p16_p10) target bundleno = 5 (0x5), region = 77 }
 0x293   :  { %428 = vsyncpa [#allocation3], 1 }
 0x294   :  { %430 = vsyncpa [#allocation3 + $0x1], 1 }
 0x295   :  { %431 = vsyncpa [#allocation4], 1 }
 0x296   :  { %433 = vsyncpa [#allocation4 + $0x1], 1 }

</bundles_post_ra>
